<compile_context>
chip_gen: v5e
topology: v5e:2x2
jax: 0.10.0
libtpu: 0.0.40
codegen_flags: <defaults>
</compile_context>

<pallas_src>
import jax
import jax.numpy as jnp
from jax.experimental import pallas as pl
from jax.experimental.pallas import tpu as pltpu

LANES = 128
DEFAULT_TM = 1024   # row tile: 1024 x 128 f32 = 512 KiB per block (double-buffered ~1 MiB)
NUM_CORES = 2       # leading "parallel" grid axis (both TCs on v7x; no-op cost elsewhere)


def _make_kernel(n_elems, tm, tiles_per_core, mask_tail):
    inv_n = 1.0 / float(n_elems)   # static: baked at trace time (no SMEM input, no int->float divide)

    def kernel(x_ref, o_ref, acc_ref):
        c = pl.program_id(0)                    # core / outer-parallel index
        i = pl.program_id(1)                    # row-tile index within this core

        @pl.when(i == 0)
        def _init():
            acc_ref[...] = jnp.zeros_like(acc_ref)

        x = x_ref[...].astype(jnp.float32)
        z = -x
        # numerically stable softplus(z) = max(z, 0) + log1p(exp(-|z|))
        sp = jnp.maximum(z, 0.0) + jnp.log1p(jnp.exp(-jnp.abs(z)))

        if mask_tail:
            # logical (unclamped) tile index -> global element index; zero the tail.
            t = c * tiles_per_core + i
            row = jax.lax.broadcasted_iota(jnp.int32, sp.shape, 0)
            lane = jax.lax.broadcasted_iota(jnp.int32, sp.shape, 1)
            gidx = (t * tm + row) * LANES + lane
            sp = jnp.where(gidx < n_elems, sp, 0.0)

        if tm % 8 == 0:
            # VPU-only: fold the (tm, 128) tile into the (8, 128) accumulator.
            acc_ref[...] += sp.reshape(tm // 8, 8, LANES).sum(axis=0)
        else:
            # small / full-dim tile fallback
            acc_ref[0:1, :] += sp.sum(axis=0, keepdims=True)

        @pl.when(i == pl.num_programs(1) - 1)
        def _fin():
            total = jnp.sum(acc_ref[...], keepdims=True)      # (1, 1)
            o_ref[...] = (total * inv_n).reshape(1, 1, 1)

    return kernel


def wgangp_g_loss(preds, *, tile_rows=DEFAULT_TM, num_cores=NUM_CORES):
    """Equivalent of WGANGP_G().forward(preds): softplus(-preds).mean()."""
    n = preds.size
    flat = preds.reshape(-1)        # keep native dtype (bf16 stays bf16 -> half the HBM traffic)

    # Tiny lane pad only when n % 128 != 0 (rare for NCHW preds); value is
    # irrelevant because the kernel masks by true element index.
    rem = (-n) % LANES
    if rem:
        flat = jnp.concatenate([flat, jnp.zeros((rem,), dtype=flat.dtype)])
    rows = flat.shape[0] // LANES
    x2d = flat.reshape(rows, LANES)

    # Row tile: big for large inputs; full-extent block for small inputs.
    tm = tile_rows if rows >= tile_rows else rows
    tiles_total = (rows + tm - 1) // tm
    tiles_per_core = (tiles_total + num_cores - 1) // num_cores
    coverage = num_cores * tiles_per_core * tm * LANES
    mask_tail = coverage != n

    def x_index_map(c, i):
        t = c * tiles_per_core + i
        # Clamp so out-of-range tiles re-read a valid tile (their contribution
        # is zeroed by the in-kernel mask) -> no OOB DMA.
        return (jnp.minimum(t, tiles_total - 1), 0)

    kernel = _make_kernel(n, tm, tiles_per_core, mask_tail)

    partials = pl.pallas_call(
        kernel,
        out_shape=jax.ShapeDtypeStruct((num_cores, 1, 1), jnp.float32),
        grid_spec=pltpu.PrefetchScalarGridSpec(
            num_scalar_prefetch=0,
            grid=(num_cores, tiles_per_core),
            in_specs=[pl.BlockSpec((tm, LANES), x_index_map)],
            out_specs=pl.BlockSpec((1, 1, 1), lambda c, i: (c, 0, 0)),
            scratch_shapes=[pltpu.VMEM((8, LANES), jnp.float32)],
        ),
        compiler_params=pltpu.CompilerParams(
            dimension_semantics=("parallel", "arbitrary"),
        ),
    )(x2d)

    return jnp.sum(partials)


if __name__ == "__main__":
    key = jax.random.PRNGKey(0)
    # preds: discriminator scores for fake samples, e.g. (batch, C, H, W)
    preds = jax.random.normal(key, (2, 4, 16, 16), dtype=jnp.float32)

    loss = jax.block_until_ready(wgangp_g_loss(preds))

    # reference check in plain JAX
    ref = jnp.mean(jax.nn.softplus(-preds))
    assert jnp.allclose(loss, ref, atol=1e-5, rtol=1e-5), (loss, ref)

    print("KERNEL_OK")
</pallas_src>

<mosaic_0001>
module attributes {stable_mosaic.version = 11 : i64} {
  func.func @kernel(%arg0: i32, %arg1: i32, %arg2: memref<16x128xf32, #tpu.memory_space<vmem>>, %arg3: memref<1x1x1xf32, #tpu.memory_space<vmem>>, %arg4: memref<8x128xf32, #tpu.memory_space<vmem>>) attributes {dimension_semantics = [#tpu.dimension_semantics<parallel>, #tpu.dimension_semantics<arbitrary>], iteration_bounds = array<i64: 2, 1>, scalar_prefetch = 0 : i64, scratch_operands = 1 : i64, tpu.core_type = #tpu.core_type<tc>, window_params = [{transform_indices = @transform_0, window_bounds = array<i64: 16, 128>}, {transform_indices = @transform_1, window_bounds = array<i64: 1, 1, 1>}]} {
    %c0_i32 = arith.constant 0 : i32
    %0 = arith.cmpi eq, %arg1, %c0_i32 : i32
    %1 = arith.extui %0 : i1 to i32
    %c0_i32_0 = arith.constant 0 : i32
    %2 = arith.cmpi ne, %1, %c0_i32_0 : i32
    scf.if %2 {
      %cst_12 = arith.constant 0.000000e+00 : f32
      %36 = vector.broadcast %cst_12 : f32 to vector<8x128xf32>
      %c0_13 = arith.constant 0 : index
      %c0_14 = arith.constant 0 : index
      %37 = vector.load %arg4[%c0_13, %c0_14] : memref<8x128xf32, #tpu.memory_space<vmem>>, vector<8x128xf32>
      tpu.vector_store %arg4[%c0_13, %c0_14], %36 {strides = array<i32>} : memref<8x128xf32, #tpu.memory_space<vmem>>, vector<8x128xf32>,
    } else {
    }
    %c0 = arith.constant 0 : index
    %c0_1 = arith.constant 0 : index
    %3 = vector.load %arg2[%c0, %c0_1] : memref<16x128xf32, #tpu.memory_space<vmem>>, vector<16x128xf32>
    %cst = arith.constant 0.000000e+00 : f32
    %4 = vector.broadcast %cst : f32 to vector<16x128xf32>
    %5 = arith.subf %4, %3 : vector<16x128xf32>
    %cst_2 = arith.constant 0.000000e+00 : f32
    %6 = vector.broadcast %cst_2 : f32 to vector<16x128xf32>
    %7 = arith.maximumf %5, %6 : vector<16x128xf32>
    %8 = math.absf %5 : vector<16x128xf32>
    %cst_3 = arith.constant 0.000000e+00 : f32
    %9 = vector.broadcast %cst_3 : f32 to vector<16x128xf32>
    %10 = arith.subf %9, %8 : vector<16x128xf32>
    %11 = math.exp %10 : vector<16x128xf32>
    %12 = math.log1p %11 : vector<16x128xf32>
    %13 = arith.addf %7, %12 : vector<16x128xf32>
    %c1_i32 = arith.constant 1 : i32
    %14 = arith.muli %arg0, %c1_i32 : i32
    %15 = arith.addi %14, %arg1 : i32
    %16 = tpu.iota {dimensions = array<i32: 0>} : vector<16x128xi32>
    %17 = tpu.iota {dimensions = array<i32: 1>} : vector<16x128xi32>
    %c16_i32 = arith.constant 16 : i32
    %18 = arith.muli %15, %c16_i32 : i32
    %19 = vector.broadcast %18 : i32 to vector<16x128xi32>
    %20 = arith.addi %19, %16 : vector<16x128xi32>
    %c128_i32 = arith.constant 128 : i32
    %21 = vector.broadcast %c128_i32 : i32 to vector<16x128xi32>
    %22 = arith.muli %20, %21 : vector<16x128xi32>
    %23 = arith.addi %22, %17 : vector<16x128xi32>
    %c2048_i32 = arith.constant 2048 : i32
    %24 = vector.broadcast %c2048_i32 : i32 to vector<16x128xi32>
    %25 = arith.cmpi slt, %23, %24 : vector<16x128xi32>
    %cst_4 = arith.constant 0.000000e+00 : f32
    %26 = vector.broadcast %cst_4 : f32 to vector<16x128xf32>
    %27 = arith.select %25, %13, %26 : vector<16x128xi1>, vector<16x128xf32>
    %c0_5 = arith.constant 0 : index
    %c0_6 = arith.constant 0 : index
    %28 = vector.load %arg4[%c0_5, %c0_6] : memref<8x128xf32, #tpu.memory_space<vmem>>, vector<8x128xf32>
    %29 = vector.shape_cast %27 : vector<16x128xf32> to vector<2x8x128xf32>
    %cst_7 = arith.constant dense<0.000000e+00> : vector<8x128xf32>
    %30 = vector.multi_reduction <add>, %29, %cst_7 [0] : vector<2x8x128xf32> to vector<8x128xf32>
    %31 = arith.addf %28, %30 : vector<8x128xf32>
    %c0_8 = arith.constant 0 : index
    %c0_9 = arith.constant 0 : index
    %32 = vector.load %arg4[%c0_8, %c0_9] : memref<8x128xf32, #tpu.memory_space<vmem>>, vector<8x128xf32>
    tpu.vector_store %arg4[%c0_8, %c0_9], %31 {strides = array<i32>} : memref<8x128xf32, #tpu.memory_space<vmem>>, vector<8x128xf32>,
    %c0_i32_10 = arith.constant 0 : i32
    %33 = arith.cmpi eq, %arg1, %c0_i32_10 : i32
    %34 = arith.extui %33 : i1 to i32
    %c0_i32_11 = arith.constant 0 : i32
    %35 = arith.cmpi ne, %34, %c0_i32_11 : i32
    scf.if %35 {
      %c0_12 = arith.constant 0 : index
      %c0_13 = arith.constant 0 : index
      %36 = vector.load %arg4[%c0_12, %c0_13] : memref<8x128xf32, #tpu.memory_space<vmem>>, vector<8x128xf32>
      %37 = vector.shape_cast %36 : vector<8x128xf32> to vector<1x8x128xf32>
      %cst_14 = arith.constant dense<0.000000e+00> : vector<1xf32>
      %38 = vector.multi_reduction <add>, %37, %cst_14 [1, 2] : vector<1x8x128xf32> to vector<1xf32>
      %39 = vector.shape_cast %38 : vector<1xf32> to vector<1x1x1xf32>
      %40 = vector.extract %39[0, 0, 0] : f32 from vector<1x1x1xf32>
      %41 = vector.broadcast %40 : f32 to vector<1x1xf32>
      %cst_15 = arith.constant 4.8828125E-4 : f32
      %42 = vector.broadcast %cst_15 : f32 to vector<1x1xf32>
      %43 = arith.mulf %41, %42 : vector<1x1xf32>
      %44 = vector.shape_cast %43 : vector<1x1xf32> to vector<1x1x1xf32>
      %c0_16 = arith.constant 0 : index
      %c0_17 = arith.constant 0 : index
      %c0_18 = arith.constant 0 : index
      %45 = vector.load %arg3[%c0_16, %c0_17, %c0_18] : memref<1x1x1xf32, #tpu.memory_space<vmem>>, vector<1x1x1xf32>
      tpu.vector_store %arg3[%c0_16, %c0_17, %c0_18], %44 {strides = array<i32>} : memref<1x1x1xf32, #tpu.memory_space<vmem>>, vector<1x1x1xf32>,
    } else {
    }
    return
  }
  func.func @transform_0(%arg0: i32, %arg1: i32) -> (i32, i32) {
    %c1_i32 = arith.constant 1 : i32
    %0 = arith.muli %arg0, %c1_i32 : i32
    %1 = arith.addi %0, %arg1 : i32
    %c0_i32 = arith.constant 0 : i32
    %2 = arith.minsi %1, %c0_i32 : i32
    %c0_i32_0 = arith.constant 0 : i32
    %c0_i32_1 = arith.constant 0 : i32
    return %2, %c0_i32_0 : i32, i32
  }
  func.func @transform_1(%arg0: i32, %arg1: i32) -> (i32, i32, i32) {
    %c0_i32 = arith.constant 0 : i32
    %c0_i32_0 = arith.constant 0 : i32
    %c0_i32_1 = arith.constant 0 : i32
    return %arg0, %c0_i32, %c0_i32_0 : i32, i32, i32
  }
}

</mosaic_0001>

<bundles_post_ra>
// kernel: tpu_custom_call.1
= control target key start
LH: loop header
LB: loop body
LE: loop exit
PB: predicated region body
PF: predicated region fallthrough
CT: control target
= control target key end

     0   :  { %6 = vsyncpa [#allocation4], 0  ;;  %s557_s0 = inlined_call_operand.hbm [shape: f32[16,128], index: 0, kind: input, shape index: {}]   ;;  %s558_s1 = inlined_call_operand.vmem [shape: f32[2,1,1], index: 1, kind: output, shape index: {}]  }
   0x1   :  { %8 = vsyncpa [#allocation4 + $0x1], 0  ;;  %s477_s6 = smov 0   ;;  %s479_s7 = smov 0  }
   0x2   :  { %s481_s8 = smov 0   ;;  %s483_s9 = smov 0  }
   0x3   :  { %s485_s10 = smov 0  }
   0x4 LB: > { %s305_s11 = sadd.s32 4294967295, %s462_s10   ;;  %s26_s12 = sadd.s32 1, %s458_s9  ;;  %s462_s10 = sphi %s485_s10, %s14_s10   ;;  %s458_s9 = sphi %s483_s9, %s563_s9   ;;  %s454_s8 = sphi %s481_s8, %s562_s8   ;;  %s450_s7 = sphi %s479_s7, %s547_s7   ;;  %s446_s6 = sphi %s477_s6, %s561_s6  }
   0x5   : > { %p28_p0 = scmp.ge.s32.totalorder %s26_s12, 2  ;;  %p443_p1 = scmp.ne.s32.totalorder %s450_s7, 0 }
   0x6   : > { %p47_p2 = scmp.eq.s32.totalorder %s462_s10, 0  ;;  %p52_p3 = scmp.ne.s32.totalorder %s450_s7, %s446_s6 }
   0x7   : > { %s565_s12 = smov (%p28_p0, %s26_s12), 0  ;;  %p53_p4 = scmp.eq.s32.totalorder %s305_s11, 0 }
   0x8   : > { %p48_p5 = por %p443_p1, %p47_p2  ;;  %p326_p7 = scmp.lt.s32.totalorder %s462_s10, 2 }
   0x9   : > { %p507_p6 = por %p53_p4, %p52_p3  ;;  %s115_s16 = sshll.u32 %s557_s0, 4  ;;  %s116_s16 = int_to_ptr.hbm [resolvable:$true] %s115_s16 }
   0xa   : > { %s464_s17 = smov [#allocation3]   ;;  %p515_p8 = pnand %p326_p7, %p48_p5 }
   0xb   : > { %s117_s18 = sshll.u32 %s464_s17, 4  ;;  %p312_p9 = scmp.ge.s32.totalorder %s462_s10, 1  ;;  %s118_s18 = int_to_ptr.vmem [resolvable:$true] %s117_s18 }
   0xc   : > { %p125_p10 = scmp.lt.s32.totalorder %s462_s10, 3  ;;  %s385_s20 = sshra.s32 %s116_s16, 4  ;;  %s386_s20 = int_to_ptr.hbm [resolvable:$true] %s385_s20 }
   0xd   : > { %s387_s21 = scalar_lea.hbm %s386_s20, 16  ;;  %p389_p12 = pneg %p515_p8 }
   0xe   : > { %p388_p11 = scmp.ne.s32.totalorder %s386_s20, %s387_s21  ;;  %s392_s24 = scalar_lea.hbm %s557_s0, 16 }
   0xf   : > { %p394_p1 = scmp.lt.s32.totalorder %s392_s24, %s387_s21 }
  0x10   : > { %p390_p13 = pnand %p389_p12, %p388_p11 }
  0x12   : > { %p391_p0 = pneg %p390_p13 }
  0x14   : > { %p396_p2 = pnand %p394_p1, %p391_p0 }
  0x16   : > { %399 = shalt.err (!%p396_p2)
}
  0x17   : > { %s465_s25 = smov 128   ;;  %s466_s26 = smov 8  }
  0x18   : > { %325 = dma.hbm_to_vmem [thread:$0]  (!%p515_p8), %s116_s16, 256, %s118_s18, [#allocation4], %s465_s25, %s465_s25, %s466_s26  }
  0x19   : > { %p126_p3 = pnand %p312_p9, %p125_p10 }
  0x1a   : > { %s131_s27 = sand.u32 (!%p126_p3), 1, %s450_s7  }
  0x1b   : > { %129 = sbr.rel (%p126_p3) target bundleno = 249 (0xf9), region = 24  ;;  %s313_s28 = sshll.u32 (!%p126_p3), %s131_s27, 4 }
  0x1c   : > { %s132_s29 = scalar_lea.sflag (!%p126_p3), [#allocation4], %s131_s27  ;;  %s135_s30 = scalar_lea.vmem (!%p126_p3), [#allocation3], %s313_s28 }
  0x20   : > { %440 = dma.done.wait (%p507_p6), %s132_s29, 256  }
  0x21   : > { %442 = vsyncadd (%p507_p6), %s132_s29, 4294967040  ;;  %v165_v0 = vld [vmem:[%s135_s30] sm:$0xff]  ;;  %v166_v1 = vld [vmem:[%s135_s30 + $0x8] sm:$0xff]  ;;  %v200_v6 = vlaneseq  ;;  %s314_s2 = sshll.u32 %s454_s8, 4  ;;  %p157_p4 = scmp.lt.s32.totalorder %s454_s8, 1  ;;  %vm236_vm4 = vcmask 0  }
  0x22   : > { %v167_v2 = vsub.f32 0.0, %v165_v0  ;;  %v168_v3 = vsub.f32 0.0, %v166_v1  ;;  %v206_v13 = vstv %s314_s2 }
  0x23   : > { %v201_v11 = vshrl.u32 %v200_v6, 7  ;;  %v204_v23 = vand.u32 127, %v200_v6  ;;  %s567_s8 = smov (!%p157_p4, %s454_s8), 1 }
  0x24   : > { %v171_v4 = vand.u32 2147483647, %v167_v2  ;;  %v172_v5 = vand.u32 2147483647, %v168_v3  ;;  %v169_v32 = vmax.f32 %v167_v2, 0.0  ;;  %v170_v36 = vmax.f32 %v168_v3, 0.0  ;;  %s159_s6 = scalar_lea.vmem %s558_s1, %s567_s8 }
  0x25   : > { %v202_v12 = vadd.s32 8, %v201_v11  ;;  %v207_v15 = vadd.s32 %v206_v13, %v201_v11 }
  0x26   : > { %v173_v7 = vsub.f32 0.0, %v171_v4  ;;  %v174_v8 = vsub.f32 0.0, %v172_v5 }
  0x27   : > { %v208_v19 = vadd.s32 %v206_v13, %v202_v12  ;;  %v209_v24 = vmul.u32 128, %v207_v15 }
  0x28   : > { %v175_v9 = vmul.f32 1.442695, %v173_v7  ;;  %v177_v10 = vmul.f32 1.442695, %v174_v8 }
  0x29   : > { %v210_v27 = vmul.u32 128, %v208_v19  ;;  %v211_v30 = vadd.s32 %v209_v24, %v204_v23 }
  0x2a   : > { %377 = vpow2.f32 %v175_v9 }
  0x2b   : > { %379 = vpow2.f32 %v177_v10  ;;  %v212_v34 = vadd.s32 %v210_v27, %v204_v23  ;;  %vm213_vm2 = vcmp.lt.s32.totalorder %v211_v30, 2048 }
  0x2d   : > { %vm214_vm3 = vcmp.lt.s32.totalorder %v212_v34, 2048 }
  0x30   : > { %v378_v14 = vpop.eup %377 }
  0x31   : > { %v380_v16 = vpop.eup %379  ;;  %v179_v17 = vadd.f32 1.0, %v378_v14  ;;  %v182_v18 = vmul.f32 -0.5, %v378_v14  ;;  %v185_v25 = vand.u32 2147483647, %v378_v14 }
  0x32   : > { %v188_v20 = vadd.f32 1.0, %v380_v16  ;;  %v191_v21 = vmul.f32 -0.5, %v380_v16  ;;  %v194_v28 = vand.u32 2147483647, %v380_v16 }
  0x33   : > { %381 = vlog2.f32 %v179_v17  ;;  %v183_v22 = vadd.f32 1.0, %v182_v18  ;;  %vm186_vm0 = vcmp.lt.f32.partialorder %v185_v25, 0.0004427343 }
  0x34   : > { %383 = vlog2.f32 %v188_v20  ;;  %v192_v26 = vadd.f32 1.0, %v191_v21  ;;  %vm195_vm1 = vcmp.lt.f32.partialorder %v194_v28, 0.0004427343 }
  0x35   : > { %v184_v29 = vmul.f32 %v378_v14, %v183_v22 }
  0x36   : > { %v193_v33 = vmul.f32 %v380_v16, %v192_v26 }
  0x39   : > { %v382_v31 = vpop.eup %381 }
  0x3a   : > { %v384_v35 = vpop.eup %383  ;;  %v181_v37 = vmul.f32 0.6931472, %v382_v31 }
  0x3b   : > { %v190_v38 = vmul.f32 0.6931472, %v384_v35 }
  0x3c   : > { %v187_v39 = vsel %vm186_vm0, %v184_v29, %v181_v37 }
  0x3d   : > { %v196_v40 = vsel %vm195_vm1, %v193_v33, %v190_v38  ;;  %v197_v41 = vadd.f32 %v187_v39, %v169_v32 }
  0x3e   : > { %v198_v42 = vadd.f32 %v196_v40, %v170_v36 }
  0x3f   : > { %v215_v43 = vsel %vm213_vm2, %v197_v41, 0.0 }
  0x40   : > { %v216_v44 = vsel %vm214_vm3, %v198_v42, 0.0 }
  0x41   : > { %v218_v45 = vadd.f32 %v216_v44, %v215_v43 }
  0x43   : > { %225 = vadd.xlane.f32.xlu0 %v218_v45 }
  0xb6   : > { %v226_v46 = vpop.xlane.xlu0 %225 }
  0xb7   : > { %v227_v47 = vrot.slane %v226_v46, 4 }
  0xb9   : > { %v228_v48 = vadd.f32 %v227_v47, %v226_v46 }
  0xbb   : > { %v229_v49 = vrot.slane %v228_v48, 2 }
  0xbd   : > { %v230_v50 = vadd.f32 %v229_v49, %v228_v48 }
  0xbf   : > { %v231_v51 = vrot.slane %v230_v50, 1 }
  0xc1   : > { %v232_v52 = vadd.f32 %v231_v51, %v230_v50 }
  0xc3   : > { %318 = vpush %v232_v52 }
  0xf4   : > { %s319_s3 = spop %318 }
  0xf5   : > { %v234_v53 = vstv %s319_s3 }
  0xf6   : > { %v235_v54 = vmul.f32 0.00048828125, %v234_v53 }
  0xf8   : > { %237 = vst.msk [vmem:[%s159_s6] sm:$0x1] %vm236_vm4, %v235_v54 }
  0xf9 PF: > { %s14_s10 = sadd.s32 1, %s462_s10   ;;  %s561_s6 = smov %s450_s7 }
  0xfa   : > { %p11_p5 = scmp.ge.s32.totalorder %s14_s10, 4   ;;  %s547_s7 = smov 0  }
  0xfb   : > { %s562_s8 = smov %s458_s9  ;;  %s563_s9 = smov %s565_s12 }
  0xfc   :  { %13 = sbr.rel (!%p11_p5) target bundleno = 4 (0x4), region = 72 }
 0x101   :  { %255 = vsyncpa [#allocation4], 1 }
 0x102   :  { %257 = vsyncpa [#allocation4 + $0x1], 1 }

</bundles_post_ra>
